<compile_context>
chip_gen: v7x
topology: tpu7x:2x2x1
jax: 0.10.0
libtpu: 0.0.40
codegen_flags: <defaults>
</compile_context>

<pallas_src>
import functools
import math

import jax
import jax.numpy as jnp
from jax.experimental import pallas as pl
from jax.experimental.pallas import tpu as pltpu


def _round_up(x, m):
    return ((x + m - 1) // m) * m


def _fused_decoder_kernel(x_ref, *refs, n_chunk=128):
    """Fused decoder: (Linear+ReLU) x (n-1), then Linear+Sigmoid.

    refs = (w1, b1, ..., wn, bn, o_ref); all blocks are VMEM-resident.
    Weights are bf16 (MXU-native); accumulation and epilogues are f32.
    The last layer is chunked over output columns and only the real
    (unpadded) columns are stored to o_ref.
    """
    o_ref = refs[-1]
    wb = refs[:-1]
    n_layers = len(wb) // 2

    # Hidden layers: Linear + ReLU, entirely on-chip.
    h = x_ref[...]
    for i in range(n_layers - 1):
        w_ref = wb[2 * i]
        b_ref = wb[2 * i + 1]
        y = jnp.dot(h.astype(w_ref.dtype), w_ref[...],
                    preferred_element_type=jnp.float32) + b_ref[...]
        h = jnp.maximum(y, 0.0)                      # ReLU (f32, VPU)

    # Last layer: Linear + Sigmoid, chunked over N (128-wide column slices).
    w_ref = wb[-2]
    b_ref = wb[-1]
    d_pad = w_ref.shape[1]          # padded (multiple of 128) matmul N
    d_out = o_ref.shape[1]          # real output features (784)
    h = h.astype(w_ref.dtype)
    for c in range(0, d_pad, n_chunk):
        width = min(n_chunk, d_pad - c)
        real = min(width, d_out - c)
        if real <= 0:
            continue
        y = jnp.dot(h, w_ref[:, pl.ds(c, width)],
                    preferred_element_type=jnp.float32) + b_ref[:, pl.ds(c, width)]
        # Sigmoid via a single transcendental: sigmoid(y) = 0.5*(tanh(y/2)+1)
        s = 0.5 * (jnp.tanh(0.5 * y) + 1.0)
        o_ref[:, pl.ds(c, real)] = s[:, :real].astype(o_ref.dtype)


def init_decoder_params(decoder_dim, key):
    """Deterministic init mimicking nn.Linear default (uniform +/- 1/sqrt(fan_in))."""
    params = []
    for i in range(len(decoder_dim) - 1):
        d_in, d_out = decoder_dim[i], decoder_dim[i + 1]
        key, kw, kb = jax.random.split(key, 3)
        bound = 1.0 / math.sqrt(d_in)
        w = jax.random.uniform(kw, (d_in, d_out), jnp.float32, -bound, bound)
        b = jax.random.uniform(kb, (d_out,), jnp.float32, -bound, bound)
        params.append((w, b))
    return params


def prepare_kernel_params(params):
    """Pack (W, b) f32 params into the fused-kernel format.

    * weights -> bf16 (MXU-native),
    * biases  -> (1, d_out) f32,
    * the LAST layer weight/bias are zero-padded to a multiple of 128 output
      columns (784 -> 896) so the last-layer matmul N and the weight-slab
      column slices are lane-aligned.  The kernel only stores the real
      columns, so the padding never reaches HBM.
    """
    n = len(params)
    prepped = []
    for i, (w, b) in enumerate(params):
        d_out = w.shape[1]
        if i == n - 1:
            d_pad = _round_up(d_out, 128)
            if d_pad != d_out:
                w = jnp.pad(w, ((0, 0), (0, d_pad - d_out)))
                b = jnp.pad(b, (0, d_pad - d_out))
        prepped.append((w.astype(jnp.bfloat16),
                        b.reshape(1, -1).astype(jnp.float32)))
    return prepped


def decoder_forward(x, kernel_params, out_features, *, b_tile=1024,
                    out_dtype=jnp.bfloat16):
    """Fused decoder forward.  x: (B, latent) f32 -> (B, 1, 28, 28) out_dtype."""
    B, d_in = x.shape
    d_out = out_features

    # Pad batch only to a sublane multiple (8); the grid uses cdiv with a
    # masked tail tile instead of padding B up to a tile multiple.
    Bp = _round_up(B, 8)
    if Bp != B:
        x = jnp.pad(x, ((0, Bp - B), (0, 0)))

    # Batch tile: large enough to amortize per-grid-step overhead, capped so
    # the grid keeps >= 2 tiles when possible (v7x: 2 TensorCores share the
    # "parallel" axis).
    bt = min(b_tile, _round_up(pl.cdiv(Bp, 2), 8), Bp)
    bt = max(bt, 8)
    grid = (pl.cdiv(Bp, bt),)

    in_specs = [pl.BlockSpec((bt, d_in), lambda i: (i, 0))]
    flat_params = []
    for (w, b) in kernel_params:
        # Constant block index across the grid -> weights/biases stay resident
        # in VMEM (fetched once, reused by every batch tile).
        in_specs.append(pl.BlockSpec(w.shape, lambda i: (0, 0)))
        in_specs.append(pl.BlockSpec(b.shape, lambda i: (0, 0)))
        flat_params.extend([w, b])

    out = pl.pallas_call(
        _fused_decoder_kernel,
        out_shape=jax.ShapeDtypeStruct((Bp, d_out), out_dtype),
        grid=grid,
        in_specs=in_specs,
        out_specs=pl.BlockSpec((bt, d_out), lambda i: (i, 0)),
        compiler_params=pltpu.CompilerParams(
            dimension_semantics=("parallel",),        # megacore sharding on v7x
            vmem_limit_bytes=32 * 1024 * 1024),
    )(x, *flat_params)

    if Bp != B:
        out = out[:B]
    # PyTorch reshape (pure metadata: 784 = 1*28*28, row-major).
    return out.reshape(B, 1, 28, 28)


def decoder_reference(x, kernel_params, out_features):
    """Pure-JAX reference using the same (bf16-weight) params, f32 math."""
    h = x
    n = len(kernel_params)
    for i, (w, b) in enumerate(kernel_params):
        y = jnp.dot(h.astype(w.dtype), w,
                    preferred_element_type=jnp.float32) + b
        h = jnp.maximum(y, 0.0) if i < n - 1 else jax.nn.sigmoid(y)
    return h[:, :out_features].reshape(x.shape[0], 1, 28, 28)


if __name__ == "__main__":
    # decoder_dim implies the last layer produces 784 = 28*28 features.
    latent_dim = 32
    decoder_dim = [latent_dim, 128, 256, 784]
    batch = 8  # small test batch; kernel tiles/pads any batch size

    key = jax.random.PRNGKey(0)
    key, kx = jax.random.split(key)
    x = jax.random.normal(kx, (batch, latent_dim), jnp.float32)

    params = init_decoder_params(decoder_dim, key)
    kparams = prepare_kernel_params(params)

    fwd = jax.jit(functools.partial(decoder_forward,
                                    out_features=decoder_dim[-1]))
    out = jax.block_until_ready(fwd(x, kparams))

    assert out.shape == (batch, 1, 28, 28), out.shape
    assert out.dtype == jnp.bfloat16, out.dtype
    # Sigmoid output must lie in [0, 1].
    out_f32 = out.astype(jnp.float32)
    assert bool(jnp.all(out_f32 >= 0.0)) and bool(jnp.all(out_f32 <= 1.0))

    # Numerical check against a pure-JAX reference with the same bf16 weights
    # (tolerance covers bf16 output rounding + tanh-form sigmoid).
    ref = decoder_reference(x, kparams, decoder_dim[-1])
    max_err = float(jnp.max(jnp.abs(out_f32 - ref)))
    assert max_err < 2e-2, f"max |err| = {max_err}"

    print("KERNEL_OK")
</pallas_src>

<mosaic_0001>
module attributes {stable_mosaic.version = 11 : i64} {
  func.func @_fused_decoder_kernel(%arg0: i32, %arg1: memref<8x32xf32, #tpu.memory_space<vmem>>, %arg2: memref<32x128xbf16, #tpu.memory_space<vmem>>, %arg3: memref<1x128xf32, #tpu.memory_space<vmem>>, %arg4: memref<128x256xbf16, #tpu.memory_space<vmem>>, %arg5: memref<1x256xf32, #tpu.memory_space<vmem>>, %arg6: memref<256x896xbf16, #tpu.memory_space<vmem>>, %arg7: memref<1x896xf32, #tpu.memory_space<vmem>>, %arg8: memref<8x784xbf16, #tpu.memory_space<vmem>>) attributes {dimension_semantics = [#tpu.dimension_semantics<parallel>], iteration_bounds = array<i64: 1>, scalar_prefetch = 0 : i64, scratch_operands = 0 : i64, tpu.core_type = #tpu.core_type<tc>, window_params = [{transform_indices = @transform_0, window_bounds = array<i64: 8, 32>}, {pipeline_mode = #tpu.pipeline_mode<synchronous>, transform_indices = @transform_1, window_bounds = array<i64: 32, 128>}, {pipeline_mode = #tpu.pipeline_mode<synchronous>, transform_indices = @transform_2, window_bounds = array<i64: 1, 128>}, {pipeline_mode = #tpu.pipeline_mode<synchronous>, transform_indices = @transform_3, window_bounds = array<i64: 128, 256>}, {pipeline_mode = #tpu.pipeline_mode<synchronous>, transform_indices = @transform_4, window_bounds = array<i64: 1, 256>}, {pipeline_mode = #tpu.pipeline_mode<synchronous>, transform_indices = @transform_5, window_bounds = array<i64: 256, 896>}, {pipeline_mode = #tpu.pipeline_mode<synchronous>, transform_indices = @transform_6, window_bounds = array<i64: 1, 896>}, {transform_indices = @transform_7, window_bounds = array<i64: 8, 784>}]} {
    %c0 = arith.constant 0 : index
    %c0_0 = arith.constant 0 : index
    %0 = vector.load %arg1[%c0, %c0_0] : memref<8x32xf32, #tpu.memory_space<vmem>>, vector<8x32xf32>
    %1 = arith.truncf %0 : vector<8x32xf32> to vector<8x32xbf16>
    %c0_1 = arith.constant 0 : index
    %c0_2 = arith.constant 0 : index
    %2 = vector.load %arg2[%c0_1, %c0_2] : memref<32x128xbf16, #tpu.memory_space<vmem>>, vector<32x128xbf16>
    %cst = arith.constant dense<0.000000e+00> : vector<8x128xf32>
    %3 = tpu.matmul %1, %2, %cst {dimension_numbers = #tpu.dot_dimension_numbers<[1], [0], [0], [1], [0, 0, 1, 1], [], []>} : vector<8x32xbf16>, vector<32x128xbf16>, vector<8x128xf32> -> vector<8x128xf32>
    %c0_3 = arith.constant 0 : index
    %c0_4 = arith.constant 0 : index
    %4 = vector.load %arg3[%c0_3, %c0_4] : memref<1x128xf32, #tpu.memory_space<vmem>>, vector<1x128xf32>
    %5 = vector.broadcast %4 : vector<1x128xf32> to vector<8x128xf32>
    %6 = arith.addf %3, %5 : vector<8x128xf32>
    %cst_5 = arith.constant 0.000000e+00 : f32
    %7 = vector.broadcast %cst_5 : f32 to vector<8x128xf32>
    %8 = arith.maximumf %6, %7 : vector<8x128xf32>
    %9 = arith.truncf %8 : vector<8x128xf32> to vector<8x128xbf16>
    %c0_6 = arith.constant 0 : index
    %c0_7 = arith.constant 0 : index
    %10 = vector.load %arg4[%c0_6, %c0_7] : memref<128x256xbf16, #tpu.memory_space<vmem>>, vector<128x256xbf16>
    %cst_8 = arith.constant dense<0.000000e+00> : vector<8x256xf32>
    %11 = tpu.matmul %9, %10, %cst_8 {dimension_numbers = #tpu.dot_dimension_numbers<[1], [0], [0], [1], [0, 0, 1, 1], [], []>} : vector<8x128xbf16>, vector<128x256xbf16>, vector<8x256xf32> -> vector<8x256xf32>
    %c0_9 = arith.constant 0 : index
    %c0_10 = arith.constant 0 : index
    %12 = vector.load %arg5[%c0_9, %c0_10] : memref<1x256xf32, #tpu.memory_space<vmem>>, vector<1x256xf32>
    %13 = vector.broadcast %12 : vector<1x256xf32> to vector<8x256xf32>
    %14 = arith.addf %11, %13 : vector<8x256xf32>
    %cst_11 = arith.constant 0.000000e+00 : f32
    %15 = vector.broadcast %cst_11 : f32 to vector<8x256xf32>
    %16 = arith.maximumf %14, %15 : vector<8x256xf32>
    %17 = arith.truncf %16 : vector<8x256xf32> to vector<8x256xbf16>
    %c0_12 = arith.constant 0 : index
    %c0_13 = arith.constant 0 : index
    %18 = vector.load %arg6[%c0_12, %c0_13] : memref<256x896xbf16, #tpu.memory_space<vmem>>, vector<256x128xbf16>
    %cst_14 = arith.constant dense<0.000000e+00> : vector<8x128xf32>
    %19 = tpu.matmul %17, %18, %cst_14 {dimension_numbers = #tpu.dot_dimension_numbers<[1], [0], [0], [1], [0, 0, 1, 1], [], []>} : vector<8x256xbf16>, vector<256x128xbf16>, vector<8x128xf32> -> vector<8x128xf32>
    %c0_15 = arith.constant 0 : index
    %c0_16 = arith.constant 0 : index
    %20 = vector.load %arg7[%c0_15, %c0_16] : memref<1x896xf32, #tpu.memory_space<vmem>>, vector<1x128xf32>
    %21 = vector.broadcast %20 : vector<1x128xf32> to vector<8x128xf32>
    %22 = arith.addf %19, %21 : vector<8x128xf32>
    %cst_17 = arith.constant 5.000000e-01 : f32
    %23 = vector.broadcast %cst_17 : f32 to vector<8x128xf32>
    %24 = arith.mulf %23, %22 : vector<8x128xf32>
    %25 = math.tanh %24 : vector<8x128xf32>
    %cst_18 = arith.constant 1.000000e+00 : f32
    %26 = vector.broadcast %cst_18 : f32 to vector<8x128xf32>
    %27 = arith.addf %25, %26 : vector<8x128xf32>
    %cst_19 = arith.constant 5.000000e-01 : f32
    %28 = vector.broadcast %cst_19 : f32 to vector<8x128xf32>
    %29 = arith.mulf %28, %27 : vector<8x128xf32>
    %30 = arith.truncf %29 : vector<8x128xf32> to vector<8x128xbf16>
    %c0_20 = arith.constant 0 : index
    %c0_21 = arith.constant 0 : index
    %31 = vector.load %arg8[%c0_20, %c0_21] : memref<8x784xbf16, #tpu.memory_space<vmem>>, vector<8x128xbf16>
    tpu.vector_store %arg8[%c0_20, %c0_21], %30 {strides = array<i32>} : memref<8x784xbf16, #tpu.memory_space<vmem>>, vector<8x128xbf16>,
    %c0_22 = arith.constant 0 : index
    %c128 = arith.constant 128 : index
    %32 = vector.load %arg6[%c0_22, %c128] : memref<256x896xbf16, #tpu.memory_space<vmem>>, vector<256x128xbf16>
    %cst_23 = arith.constant dense<0.000000e+00> : vector<8x128xf32>
    %33 = tpu.matmul %17, %32, %cst_23 {dimension_numbers = #tpu.dot_dimension_numbers<[1], [0], [0], [1], [0, 0, 1, 1], [], []>} : vector<8x256xbf16>, vector<256x128xbf16>, vector<8x128xf32> -> vector<8x128xf32>
    %c0_24 = arith.constant 0 : index
    %c128_25 = arith.constant 128 : index
    %34 = vector.load %arg7[%c0_24, %c128_25] : memref<1x896xf32, #tpu.memory_space<vmem>>, vector<1x128xf32>
    %35 = vector.broadcast %34 : vector<1x128xf32> to vector<8x128xf32>
    %36 = arith.addf %33, %35 : vector<8x128xf32>
    %cst_26 = arith.constant 5.000000e-01 : f32
    %37 = vector.broadcast %cst_26 : f32 to vector<8x128xf32>
    %38 = arith.mulf %37, %36 : vector<8x128xf32>
    %39 = math.tanh %38 : vector<8x128xf32>
    %cst_27 = arith.constant 1.000000e+00 : f32
    %40 = vector.broadcast %cst_27 : f32 to vector<8x128xf32>
    %41 = arith.addf %39, %40 : vector<8x128xf32>
    %cst_28 = arith.constant 5.000000e-01 : f32
    %42 = vector.broadcast %cst_28 : f32 to vector<8x128xf32>
    %43 = arith.mulf %42, %41 : vector<8x128xf32>
    %44 = arith.truncf %43 : vector<8x128xf32> to vector<8x128xbf16>
    %c0_29 = arith.constant 0 : index
    %c128_30 = arith.constant 128 : index
    %45 = vector.load %arg8[%c0_29, %c128_30] : memref<8x784xbf16, #tpu.memory_space<vmem>>, vector<8x128xbf16>
    tpu.vector_store %arg8[%c0_29, %c128_30], %44 {strides = array<i32>} : memref<8x784xbf16, #tpu.memory_space<vmem>>, vector<8x128xbf16>,
    %c0_31 = arith.constant 0 : index
    %c256 = arith.constant 256 : index
    %46 = vector.load %arg6[%c0_31, %c256] : memref<256x896xbf16, #tpu.memory_space<vmem>>, vector<256x128xbf16>
    %cst_32 = arith.constant dense<0.000000e+00> : vector<8x128xf32>
    %47 = tpu.matmul %17, %46, %cst_32 {dimension_numbers = #tpu.dot_dimension_numbers<[1], [0], [0], [1], [0, 0, 1, 1], [], []>} : vector<8x256xbf16>, vector<256x128xbf16>, vector<8x128xf32> -> vector<8x128xf32>
    %c0_33 = arith.constant 0 : index
    %c256_34 = arith.constant 256 : index
    %48 = vector.load %arg7[%c0_33, %c256_34] : memref<1x896xf32, #tpu.memory_space<vmem>>, vector<1x128xf32>
    %49 = vector.broadcast %48 : vector<1x128xf32> to vector<8x128xf32>
    %50 = arith.addf %47, %49 : vector<8x128xf32>
    %cst_35 = arith.constant 5.000000e-01 : f32
    %51 = vector.broadcast %cst_35 : f32 to vector<8x128xf32>
    %52 = arith.mulf %51, %50 : vector<8x128xf32>
    %53 = math.tanh %52 : vector<8x128xf32>
    %cst_36 = arith.constant 1.000000e+00 : f32
    %54 = vector.broadcast %cst_36 : f32 to vector<8x128xf32>
    %55 = arith.addf %53, %54 : vector<8x128xf32>
    %cst_37 = arith.constant 5.000000e-01 : f32
    %56 = vector.broadcast %cst_37 : f32 to vector<8x128xf32>
    %57 = arith.mulf %56, %55 : vector<8x128xf32>
    %58 = arith.truncf %57 : vector<8x128xf32> to vector<8x128xbf16>
    %c0_38 = arith.constant 0 : index
    %c256_39 = arith.constant 256 : index
    %59 = vector.load %arg8[%c0_38, %c256_39] : memref<8x784xbf16, #tpu.memory_space<vmem>>, vector<8x128xbf16>
    tpu.vector_store %arg8[%c0_38, %c256_39], %58 {strides = array<i32>} : memref<8x784xbf16, #tpu.memory_space<vmem>>, vector<8x128xbf16>,
    %c0_40 = arith.constant 0 : index
    %c384 = arith.constant 384 : index
    %60 = vector.load %arg6[%c0_40, %c384] : memref<256x896xbf16, #tpu.memory_space<vmem>>, vector<256x128xbf16>
    %cst_41 = arith.constant dense<0.000000e+00> : vector<8x128xf32>
    %61 = tpu.matmul %17, %60, %cst_41 {dimension_numbers = #tpu.dot_dimension_numbers<[1], [0], [0], [1], [0, 0, 1, 1], [], []>} : vector<8x256xbf16>, vector<256x128xbf16>, vector<8x128xf32> -> vector<8x128xf32>
    %c0_42 = arith.constant 0 : index
    %c384_43 = arith.constant 384 : index
    %62 = vector.load %arg7[%c0_42, %c384_43] : memref<1x896xf32, #tpu.memory_space<vmem>>, vector<1x128xf32>
    %63 = vector.broadcast %62 : vector<1x128xf32> to vector<8x128xf32>
    %64 = arith.addf %61, %63 : vector<8x128xf32>
    %cst_44 = arith.constant 5.000000e-01 : f32
    %65 = vector.broadcast %cst_44 : f32 to vector<8x128xf32>
    %66 = arith.mulf %65, %64 : vector<8x128xf32>
    %67 = math.tanh %66 : vector<8x128xf32>
    %cst_45 = arith.constant 1.000000e+00 : f32
    %68 = vector.broadcast %cst_45 : f32 to vector<8x128xf32>
    %69 = arith.addf %67, %68 : vector<8x128xf32>
    %cst_46 = arith.constant 5.000000e-01 : f32
    %70 = vector.broadcast %cst_46 : f32 to vector<8x128xf32>
    %71 = arith.mulf %70, %69 : vector<8x128xf32>
    %72 = arith.truncf %71 : vector<8x128xf32> to vector<8x128xbf16>
    %c0_47 = arith.constant 0 : index
    %c384_48 = arith.constant 384 : index
    %73 = vector.load %arg8[%c0_47, %c384_48] : memref<8x784xbf16, #tpu.memory_space<vmem>>, vector<8x128xbf16>
    tpu.vector_store %arg8[%c0_47, %c384_48], %72 {strides = array<i32>} : memref<8x784xbf16, #tpu.memory_space<vmem>>, vector<8x128xbf16>,
    %c0_49 = arith.constant 0 : index
    %c512 = arith.constant 512 : index
    %74 = vector.load %arg6[%c0_49, %c512] : memref<256x896xbf16, #tpu.memory_space<vmem>>, vector<256x128xbf16>
    %cst_50 = arith.constant dense<0.000000e+00> : vector<8x128xf32>
    %75 = tpu.matmul %17, %74, %cst_50 {dimension_numbers = #tpu.dot_dimension_numbers<[1], [0], [0], [1], [0, 0, 1, 1], [], []>} : vector<8x256xbf16>, vector<256x128xbf16>, vector<8x128xf32> -> vector<8x128xf32>
    %c0_51 = arith.constant 0 : index
    %c512_52 = arith.constant 512 : index
    %76 = vector.load %arg7[%c0_51, %c512_52] : memref<1x896xf32, #tpu.memory_space<vmem>>, vector<1x128xf32>
    %77 = vector.broadcast %76 : vector<1x128xf32> to vector<8x128xf32>
    %78 = arith.addf %75, %77 : vector<8x128xf32>
    %cst_53 = arith.constant 5.000000e-01 : f32
    %79 = vector.broadcast %cst_53 : f32 to vector<8x128xf32>
    %80 = arith.mulf %79, %78 : vector<8x128xf32>
    %81 = math.tanh %80 : vector<8x128xf32>
    %cst_54 = arith.constant 1.000000e+00 : f32
    %82 = vector.broadcast %cst_54 : f32 to vector<8x128xf32>
    %83 = arith.addf %81, %82 : vector<8x128xf32>
    %cst_55 = arith.constant 5.000000e-01 : f32
    %84 = vector.broadcast %cst_55 : f32 to vector<8x128xf32>
    %85 = arith.mulf %84, %83 : vector<8x128xf32>
    %86 = arith.truncf %85 : vector<8x128xf32> to vector<8x128xbf16>
    %c0_56 = arith.constant 0 : index
    %c512_57 = arith.constant 512 : index
    %87 = vector.load %arg8[%c0_56, %c512_57] : memref<8x784xbf16, #tpu.memory_space<vmem>>, vector<8x128xbf16>
    tpu.vector_store %arg8[%c0_56, %c512_57], %86 {strides = array<i32>} : memref<8x784xbf16, #tpu.memory_space<vmem>>, vector<8x128xbf16>,
    %c0_58 = arith.constant 0 : index
    %c640 = arith.constant 640 : index
    %88 = vector.load %arg6[%c0_58, %c640] : memref<256x896xbf16, #tpu.memory_space<vmem>>, vector<256x128xbf16>
    %cst_59 = arith.constant dense<0.000000e+00> : vector<8x128xf32>
    %89 = tpu.matmul %17, %88, %cst_59 {dimension_numbers = #tpu.dot_dimension_numbers<[1], [0], [0], [1], [0, 0, 1, 1], [], []>} : vector<8x256xbf16>, vector<256x128xbf16>, vector<8x128xf32> -> vector<8x128xf32>
    %c0_60 = arith.constant 0 : index
    %c640_61 = arith.constant 640 : index
    %90 = vector.load %arg7[%c0_60, %c640_61] : memref<1x896xf32, #tpu.memory_space<vmem>>, vector<1x128xf32>
    %91 = vector.broadcast %90 : vector<1x128xf32> to vector<8x128xf32>
    %92 = arith.addf %89, %91 : vector<8x128xf32>
    %cst_62 = arith.constant 5.000000e-01 : f32
    %93 = vector.broadcast %cst_62 : f32 to vector<8x128xf32>
    %94 = arith.mulf %93, %92 : vector<8x128xf32>
    %95 = math.tanh %94 : vector<8x128xf32>
    %cst_63 = arith.constant 1.000000e+00 : f32
    %96 = vector.broadcast %cst_63 : f32 to vector<8x128xf32>
    %97 = arith.addf %95, %96 : vector<8x128xf32>
    %cst_64 = arith.constant 5.000000e-01 : f32
    %98 = vector.broadcast %cst_64 : f32 to vector<8x128xf32>
    %99 = arith.mulf %98, %97 : vector<8x128xf32>
    %100 = arith.truncf %99 : vector<8x128xf32> to vector<8x128xbf16>
    %c0_65 = arith.constant 0 : index
    %c640_66 = arith.constant 640 : index
    %101 = vector.load %arg8[%c0_65, %c640_66] : memref<8x784xbf16, #tpu.memory_space<vmem>>, vector<8x128xbf16>
    tpu.vector_store %arg8[%c0_65, %c640_66], %100 {strides = array<i32>} : memref<8x784xbf16, #tpu.memory_space<vmem>>, vector<8x128xbf16>,
    %c0_67 = arith.constant 0 : index
    %c768 = arith.constant 768 : index
    %102 = vector.load %arg6[%c0_67, %c768] : memref<256x896xbf16, #tpu.memory_space<vmem>>, vector<256x128xbf16>
    %cst_68 = arith.constant dense<0.000000e+00> : vector<8x128xf32>
    %103 = tpu.matmul %17, %102, %cst_68 {dimension_numbers = #tpu.dot_dimension_numbers<[1], [0], [0], [1], [0, 0, 1, 1], [], []>} : vector<8x256xbf16>, vector<256x128xbf16>, vector<8x128xf32> -> vector<8x128xf32>
    %c0_69 = arith.constant 0 : index
    %c768_70 = arith.constant 768 : index
    %104 = vector.load %arg7[%c0_69, %c768_70] : memref<1x896xf32, #tpu.memory_space<vmem>>, vector<1x128xf32>
    %105 = vector.broadcast %104 : vector<1x128xf32> to vector<8x128xf32>
    %106 = arith.addf %103, %105 : vector<8x128xf32>
    %cst_71 = arith.constant 5.000000e-01 : f32
    %107 = vector.broadcast %cst_71 : f32 to vector<8x128xf32>
    %108 = arith.mulf %107, %106 : vector<8x128xf32>
    %109 = math.tanh %108 : vector<8x128xf32>
    %cst_72 = arith.constant 1.000000e+00 : f32
    %110 = vector.broadcast %cst_72 : f32 to vector<8x128xf32>
    %111 = arith.addf %109, %110 : vector<8x128xf32>
    %cst_73 = arith.constant 5.000000e-01 : f32
    %112 = vector.broadcast %cst_73 : f32 to vector<8x128xf32>
    %113 = arith.mulf %112, %111 : vector<8x128xf32>
    %114 = vector.extract_strided_slice %113 {offsets = [0, 0], sizes = [8, 16], strides = [1, 1]} : vector<8x128xf32> to vector<8x16xf32>
    %115 = arith.truncf %114 : vector<8x16xf32> to vector<8x16xbf16>
    %c0_74 = arith.constant 0 : index
    %c768_75 = arith.constant 768 : index
    %116 = vector.load %arg8[%c0_74, %c768_75] : memref<8x784xbf16, #tpu.memory_space<vmem>>, vector<8x16xbf16>
    tpu.vector_store %arg8[%c0_74, %c768_75], %115 {strides = array<i32>} : memref<8x784xbf16, #tpu.memory_space<vmem>>, vector<8x16xbf16>,
    return
  }
  func.func @transform_0(%arg0: i32) -> (i32, i32) {
    %c0_i32 = arith.constant 0 : i32
    %c0_i32_0 = arith.constant 0 : i32
    return %arg0, %c0_i32 : i32, i32
  }
  func.func @transform_1(%arg0: i32) -> (i32, i32) {
    %c0_i32 = arith.constant 0 : i32
    %c0_i32_0 = arith.constant 0 : i32
    %c0_i32_1 = arith.constant 0 : i32
    return %c0_i32, %c0_i32_0 : i32, i32
  }
  func.func @transform_2(%arg0: i32) -> (i32, i32) {
    %c0_i32 = arith.constant 0 : i32
    %c0_i32_0 = arith.constant 0 : i32
    %c0_i32_1 = arith.constant 0 : i32
    return %c0_i32, %c0_i32_0 : i32, i32
  }
  func.func @transform_3(%arg0: i32) -> (i32, i32) {
    %c0_i32 = arith.constant 0 : i32
    %c0_i32_0 = arith.constant 0 : i32
    %c0_i32_1 = arith.constant 0 : i32
    return %c0_i32, %c0_i32_0 : i32, i32
  }
  func.func @transform_4(%arg0: i32) -> (i32, i32) {
    %c0_i32 = arith.constant 0 : i32
    %c0_i32_0 = arith.constant 0 : i32
    %c0_i32_1 = arith.constant 0 : i32
    return %c0_i32, %c0_i32_0 : i32, i32
  }
  func.func @transform_5(%arg0: i32) -> (i32, i32) {
    %c0_i32 = arith.constant 0 : i32
    %c0_i32_0 = arith.constant 0 : i32
    %c0_i32_1 = arith.constant 0 : i32
    return %c0_i32, %c0_i32_0 : i32, i32
  }
  func.func @transform_6(%arg0: i32) -> (i32, i32) {
    %c0_i32 = arith.constant 0 : i32
    %c0_i32_0 = arith.constant 0 : i32
    %c0_i32_1 = arith.constant 0 : i32
    return %c0_i32, %c0_i32_0 : i32, i32
  }
  func.func @transform_7(%arg0: i32) -> (i32, i32) {
    %c0_i32 = arith.constant 0 : i32
    %c0_i32_0 = arith.constant 0 : i32
    return %arg0, %c0_i32 : i32, i32
  }
}

</mosaic_0001>

<bundles_post_ra>
// kernel: decoder_forward.1
= control target key start
LH: loop header
LB: loop body
LE: loop exit
PB: predicated region body
PF: predicated region fallthrough
CT: control target
= control target key end

     0   :  { %12 = vsyncpa [#allocation3], 0  ;;  %s2309_s0 = inlined_call_operand.hbm [shape: f32[8,32], index: 0, kind: input, shape index: {}]   ;;  %s2310_s1 = inlined_call_operand.hbm [shape: bf16[32,128], index: 1, kind: input, shape index: {}]   ;;  %s2311_s2 = inlined_call_operand.vmem [shape: f32[1,128], index: 2, kind: input, shape index: {}]   ;;  %s2312_s3 = inlined_call_operand.hbm [shape: bf16[128,256], index: 3, kind: input, shape index: {}]   ;;  %s2313_s4 = inlined_call_operand.vmem [shape: f32[1,256], index: 4, kind: input, shape index: {}]   ;;  %s2314_s5 = inlined_call_operand.hbm [shape: bf16[256,896], index: 5, kind: input, shape index: {}]   ;;  %s2315_s6 = inlined_call_operand.vmem [shape: f32[1,896], index: 6, kind: input, shape index: {}]   ;;  %s2316_s7 = inlined_call_operand.vmem [shape: bf16[8,784], index: 7, kind: output, shape index: {}]  }
   0x1   :  { %13 = vsyncpa [#allocation5], 0 }
   0x2   :  { %14 = vsyncpa [#allocation8], 0  ;;  %s2142_s24 = smov [#allocation4]   ;;  %s2048_s28 = scalar_lea.hbm %s2310_s1, 256 }
   0x3   :  { %s30_s25 = sshll.u32 %s2142_s24, 4  ;;  %p2049_p0 = scmp.ne.s32.totalorder %s2310_s1, %s2048_s28  ;;  %s31_s25 = int_to_ptr.vmem [resolvable:$true] %s30_s25 }
   0x4   :  { %p2052_p1 = scmp.lt.u32.totalorder %s2048_s28, %s2310_s1 }
   0x6   :  { %p2054_p2 = pnand %p2052_p1, %p2049_p0 }
   0x8   :  { %2057 = shalt.err (!%p2054_p2)
}
   0x9   :  { %s2058_s10 = scalar_lea.vmem %s31_s25, 256  ;;  %p2063_p4 = scmp.lt.s32.totalorder %s31_s25, %s31_s25 }
   0xa   :  { %p2059_p3 = scmp.ne.s32.totalorder %s31_s25, %s2058_s10  ;;  %p2064_p5 = scmp.lt.s32.totalorder %s2058_s10, %s2058_s10 }
   0xc   :  { %p2065_p6 = por %p2064_p5, %p2063_p4 }
   0xe   :  { %p2066_p7 = pnand %p2065_p6, %p2059_p3 }
  0x10   :  { %2069 = shalt.err (!%p2066_p7)
}
  0x11   :  { %s2143_s11 = smov 64   ;;  %s2144_s12 = smov 4  }
  0x12   :  { %36 = dma.hbm_to_vmem [thread:$0]  %s2310_s1, 256, %s31_s25, [#allocation5], %s2143_s11, %s2143_s11, %s2144_s12  }
  0x13   :  { %s2145_s15 = smov [#allocation2]   ;;  %s2146_s17 = smov [#allocation6]  }
  0x14   :  { %s21_s16 = sshll.u32 %s2145_s15, 4  ;;  %s44_s18 = sshll.u32 %s2146_s17, 4  ;;  %s22_s16 = int_to_ptr.vmem [resolvable:$true] %s21_s16  ;;  %s45_s18 = int_to_ptr.vmem [resolvable:$true] %s44_s18 }
  0x15   :  { %s2070_s21 = scalar_lea.hbm %s2309_s0, 128 }
  0x16   :  { %p2071_p8 = scmp.ne.s32.totalorder %s2309_s0, %s2070_s21  ;;  %p2074_p9 = scmp.lt.u32.totalorder %s2070_s21, %s2309_s0 }
  0x18   :  { %p2076_p10 = pnand %p2074_p9, %p2071_p8 }
  0x1a   :  { %2079 = shalt.err (!%p2076_p10)
}
  0x1b   :  { %s2080_s1 = scalar_lea.vmem %s22_s16, 128  ;;  %p2085_p12 = scmp.lt.s32.totalorder %s22_s16, %s22_s16 }
  0x1c   :  { %p2081_p11 = scmp.ne.s32.totalorder %s22_s16, %s2080_s1  ;;  %p2086_p13 = scmp.lt.s32.totalorder %s2080_s1, %s2080_s1 }
  0x1e   :  { %p2087_p0 = por %p2086_p13, %p2085_p12 }
  0x20   :  { %p2088_p1 = pnand %p2087_p0, %p2081_p11 }
  0x22   :  { %2091 = shalt.err (!%p2088_p1)
}
  0x23   :  { %24 = dma.hbm_to_vmem [thread:$0]  %s2309_s0, 128, %s22_s16, [#allocation3]  }
  0x24   :  { %s2092_s30 = scalar_lea.hbm %s2312_s3, 2048 }
  0x25   :  { %p2093_p2 = scmp.ne.s32.totalorder %s2312_s3, %s2092_s30  ;;  %p2096_p3 = scmp.lt.u32.totalorder %s2092_s30, %s2312_s3 }
  0x27   :  { %p2098_p4 = pnand %p2096_p3, %p2093_p2 }
  0x29   :  { %2101 = shalt.err (!%p2098_p4)
}
  0x2a   :  { %s2102_s12 = scalar_lea.vmem %s45_s18, 2048  ;;  %p2107_p6 = scmp.lt.s32.totalorder %s45_s18, %s45_s18 }
  0x2b   :  { %p2103_p5 = scmp.ne.s32.totalorder %s45_s18, %s2102_s12  ;;  %p2108_p7 = scmp.lt.s32.totalorder %s2102_s12, %s2102_s12 }
  0x2d   :  { %p2109_p8 = por %p2108_p7, %p2107_p6 }
  0x2f   :  { %p2110_p9 = pnand %p2109_p8, %p2103_p5 }
  0x31   :  { %2113 = shalt.err (!%p2110_p9)
}
  0x32   :  { %s2147_s0 = smov 128   ;;  %s2148_s13 = smov 8  }
  0x33   :  { %50 = dma.hbm_to_vmem [thread:$0]  %s2312_s3, 2048, %s45_s18, [#allocation5], %s2147_s0, %s2147_s0, %s2148_s13  }
  0x34   :  { %s2149_s16 = smov [#allocation7]   ;;  %s2114_s21 = scalar_lea.hbm %s2314_s5, 14336 }
  0x35   :  { %s58_s17 = sshll.u32 %s2149_s16, 4  ;;  %p2115_p10 = scmp.ne.s32.totalorder %s2314_s5, %s2114_s21  ;;  %s59_s17 = int_to_ptr.vmem [resolvable:$true] %s58_s17 }
  0x36   :  { %p2118_p11 = scmp.lt.u32.totalorder %s2114_s21, %s2314_s5 }
  0x38   :  { %p2120_p12 = pnand %p2118_p11, %p2115_p10 }
  0x3a   :  { %2123 = shalt.err (!%p2120_p12)
}
  0x3b   :  { %s2124_s1 = scalar_lea.vmem %s59_s17, 14336  ;;  %p2129_p0 = scmp.lt.s32.totalorder %s59_s17, %s59_s17 }
  0x3c   :  { %p2125_p13 = scmp.ne.s32.totalorder %s59_s17, %s2124_s1  ;;  %p2130_p1 = scmp.lt.s32.totalorder %s2124_s1, %s2124_s1 }
  0x3e   :  { %p2131_p2 = por %p2130_p1, %p2129_p0 }
  0x40   :  { %p2132_p3 = pnand %p2131_p2, %p2125_p13 }
  0x42   :  { %2135 = shalt.err (!%p2132_p3)
}
  0x43   :  { %s2150_s3 = smov 448   ;;  %s2151_s18 = smov 28  }
  0x44   :  { %64 = dma.hbm_to_vmem [thread:$0]  %s2314_s5, 14336, %s59_s17, [#allocation8], %s2150_s3, %s2150_s3, %s2151_s18  }
  0x45   :  { %2136 = dma.done.wait [#allocation3], 128  }
  0x46   :  { %2137 = vsyncadd [#allocation3], 4294967168 }
  0x47   :  { %2138 = dma.done.wait [#allocation5], 2304  }
  0x48   :  { %2139 = vsyncadd [#allocation5], 4294964992 }
  0x49   :  { %2140 = dma.done.wait [#allocation8], 14336  }
  0x4a   :  { %2141 = vsyncadd [#allocation8], 4294952960  ;;  %v2152_v0 = vmov 0.0   ;;  %vm2153_vm0 = vmmov 0   ;;  %v1896_v1 = vld [vmem:[#allocation4] sm:$0xff]   ;;  %v1897_v2 = vld [vmem:[#allocation4 + $0x8] sm:$0xff]  }
  0x4b   :  { %1875 = vmatprep.subr.bf16.mxu0 %v2152_v0  ;;  %1879 = vmatprep.mubr.msk.bf16.mxu0 %vm2153_vm0, %v2152_v0  ;;  %v80_v3 = vld [vmem:[#allocation2] sm:$0xff]  ;;  %v1901_v6 = vld [vmem:[#allocation6 + $0x14] ss:$8 sps:$4 sm:$0xff]   ;;  %vm105_vm1 = vcmask 261120   ;;  %v1903_v8 = vld [vmem:[#allocation6 + $0x10] ss:$8 sps:$4 sm:$0xff]  }
  0x4c   :  { %1876 = vmatpush3.bf16.msra.mxu0 %v1896_v1  ;;  %v1898_v4 = vld [vmem:[#allocation6 + $0x4] ss:$8 sps:$4 sm:$0xff]   ;;  %v1900_v5 = vld [vmem:[#allocation6] ss:$8 sps:$4 sm:$0xff]   ;;  %v81_v7 = vpack.c.bf16 %v80_v3, %v80_v3  ;;  %v1907_v11 = vld [vmem:[#allocation6 + $0x34] ss:$8 sps:$4 sm:$0xff]  }
  0x4d   :  { %1877 = vmatprep.subr.bf16.mxu0 %v2152_v0  ;;  %259 = vmatprep.subr.bf16.mxu1 %v1898_v4  ;;  %v1904_v9 = vld [vmem:[#allocation6 + $0x24] ss:$8 sps:$4 sm:$0xff]   ;;  %v1906_v10 = vld [vmem:[#allocation6 + $0x20] ss:$8 sps:$4 sm:$0xff]   ;;  %v1909_v12 = vld [vmem:[#allocation6 + $0x30] ss:$8 sps:$4 sm:$0xff]   ;;  %v169_v0 = vlaneseq }
  0x4e   :  { %260 = vmatpush1.bf16.msra.mxu1 %v1900_v5  ;;  %v1910_v13 = vld [vmem:[#allocation6 + $0x44] ss:$8 sps:$4 sm:$0xff]   ;;  %v1912_v14 = vld [vmem:[#allocation6 + $0x40] ss:$8 sps:$4 sm:$0xff]   ;;  %v1913_v15 = vld [vmem:[#allocation6 + $0x54] ss:$8 sps:$4 sm:$0xff]  }
  0x4f   :  { %261 = vmatprep.subr.bf16.mxu1 %v1901_v6  ;;  %v1915_v16 = vld [vmem:[#allocation6 + $0x50] ss:$8 sps:$4 sm:$0xff]   ;;  %v1916_v17 = vld [vmem:[#allocation6 + $0x64] ss:$8 sps:$4 sm:$0xff]   ;;  %v1918_v18 = vld [vmem:[#allocation6 + $0x60] ss:$8 sps:$4 sm:$0xff]  }
  0x50   :  { %1878 = vmatpush3.bf16.msra.mxu0 %v1897_v2  ;;  %v1919_v19 = vld [vmem:[#allocation6 + $0x74] ss:$8 sps:$4 sm:$0xff]   ;;  %v1921_v20 = vld [vmem:[#allocation6 + $0x70] ss:$8 sps:$4 sm:$0xff]   ;;  %v2154_v21 = vmov 0   ;;  %v170_v1 = vshrl.u32 %v169_v0, 7 }
  0x51   :  { %291 = vmatprep.mubr.bf16.mxu1 %v2154_v21  ;;  %v1922_v22 = vld [vmem:[#allocation7 + $0x1c0] ss:$28 sps:$4 sm:$0xff]   ;;  %v1926_v25 = vld [vmem:[#allocation7 + $0x1f8] ss:$28 sps:$4 sm:$0xff]   ;;  %v1930_v27 = vld [vmem:[#allocation7 + $0x230] ss:$28 sps:$4 sm:$0xff]  }
  0x52   :  { %262 = vmatpush1.bf16.msra.mxu1 %v1903_v8  ;;  %v1923_v23 = vld [vmem:[#allocation7 + $0x1c4] ss:$28 sps:$4 sm:$0xff]   ;;  %1721 = vmatprep.subr.bf16.mxu0 %v1922_v22  ;;  %v1928_v26 = vld [vmem:[#allocation7 + $0x38] ss:$28 sps:$4 sm:$0xff]   ;;  %v1932_v28 = vld [vmem:[#allocation7 + $0x70] ss:$28 sps:$4 sm:$0xff]  }
  0x53   :  { %1880 = vmatmul.mubr.msk.bf16.vlgmr.msra.gmra.mrb[0].mxu0 %vm105_vm1, %v81_v7  ;;  %263 = vmatprep.subr.bf16.mxu1 %v1904_v9  ;;  %v1924_v24 = vld [vmem:[#allocation7] ss:$28 sps:$4 sm:$0xff]   ;;  %v1934_v29 = vld [vmem:[#allocation7 + $0x268] ss:$28 sps:$4 sm:$0xff]   ;;  %v1942_v33 = vld [vmem:[#allocation7 + $0x2d8] ss:$28 sps:$4 sm:$0xff]  }
  0x54   :  { %1722 = vmatpush3.bf16.msra.mxu0 %v1924_v24  ;;  %v1936_v30 = vld [vmem:[#allocation7 + $0xa8] ss:$28 sps:$4 sm:$0xff]   ;;  %v1938_v31 = vld [vmem:[#allocation7 + $0x2a0] ss:$28 sps:$4 sm:$0xff]   ;;  %v1944_v34 = vld [vmem:[#allocation7 + $0x118] ss:$28 sps:$4 sm:$0xff]  }
  0x55   :  { %1723 = vmatprep.subr.bf16.mxu0 %v1926_v25  ;;  %v1940_v32 = vld [vmem:[#allocation7 + $0xe0] ss:$28 sps:$4 sm:$0xff]   ;;  %v1579_v35 = vld [vmem:[%s2311_s2] ss:$0 sm:$0xff]  ;;  %v1931_v46 = vld [vmem:[#allocation7 + $0x234] ss:$28 sps:$4 sm:$0xff]  }
  0x56   :  { %264 = vmatpush1.bf16.msra.mxu1 %v1906_v10  ;;  %v1925_v42 = vld [vmem:[#allocation7 + $0x4] ss:$28 sps:$4 sm:$0xff]   ;;  %v1927_v44 = vld [vmem:[#allocation7 + $0x1fc] ss:$28 sps:$4 sm:$0xff]   ;;  %v1933_v47 = vld [vmem:[#allocation7 + $0x74] ss:$28 sps:$4 sm:$0xff]  }
  0x57   :  { %265 = vmatprep.subr.bf16.mxu1 %v1907_v11  ;;  %v1929_v45 = vld [vmem:[#allocation7 + $0x3c] ss:$28 sps:$4 sm:$0xff]   ;;  %v1935_v48 = vld [vmem:[#allocation7 + $0x26c] ss:$28 sps:$4 sm:$0xff]   ;;  %v1939_v50 = vld [vmem:[#allocation7 + $0x2a4] ss:$28 sps:$4 sm:$0xff]  }
  0x58   :  { %1724 = vmatpush3.bf16.msra.mxu0 %v1928_v26  ;;  %v1937_v49 = vld [vmem:[#allocation7 + $0xac] ss:$28 sps:$4 sm:$0xff]   ;;  %v1941_v51 = vld [vmem:[#allocation7 + $0xe4] ss:$28 sps:$4 sm:$0xff]   ;;  %v1943_v52 = vld [vmem:[#allocation7 + $0x2dc] ss:$28 sps:$4 sm:$0xff]  }
  0x59   :  { %1725 = vmatprep.subr.bf16.mxu0 %v1930_v27  ;;  %v1945_v53 = vld [vmem:[#allocation7 + $0x11c] ss:$28 sps:$4 sm:$0xff]   ;;  %v1946_v54 = vld [vmem:[#allocation7 + $0x310] ss:$28 sps:$4 sm:$0xff]   ;;  %v1950_v58 = vld [vmem:[#allocation7 + $0x348] ss:$28 sps:$4 sm:$0xff]  }
  0x5a   :  { %266 = vmatpush1.bf16.msra.mxu1 %v1909_v12  ;;  %v1947_v55 = vld [vmem:[#allocation7 + $0x314] ss:$28 sps:$4 sm:$0xff]   ;;  %v1951_v59 = vld [vmem:[#allocation7 + $0x34c] ss:$28 sps:$4 sm:$0xff]   ;;  %v171_v2 = vsub.s32 0, %v170_v1  ;;  %v175_v4 = vsub.s32 1, %v170_v1 }
  0x5b   :  { %267 = vmatprep.subr.bf16.mxu1 %v1910_v13  ;;  %v1948_v56 = vld [vmem:[#allocation7 + $0x150] ss:$28 sps:$4 sm:$0xff]   ;;  %v1952_v60 = vld [vmem:[#allocation7 + $0x188] ss:$28 sps:$4 sm:$0xff]   ;;  %v1960_v21 = vld [vmem:[#allocation7 + $0x40] ss:$28 sps:$4 sm:$0xff]  }
  0x5c   :  { %1726 = vmatpush3.bf16.msra.mxu0 %v1932_v28  ;;  %v1949_v57 = vld [vmem:[#allocation7 + $0x154] ss:$28 sps:$4 sm:$0xff]   ;;  %v1953_v61 = vld [vmem:[#allocation7 + $0x18c] ss:$28 sps:$4 sm:$0xff]   ;;  %v1961_v22 = vld [vmem:[#allocation7 + $0x44] ss:$28 sps:$4 sm:$0xff]  }
  0x5d   :  { %1727 = vmatprep.subr.bf16.mxu0 %v1934_v29  ;;  %v1954_v62 = vld [vmem:[#allocation7 + $0x1c8] ss:$28 sps:$4 sm:$0xff]   ;;  %v1963_v24 = vld [vmem:[#allocation7 + $0x23c] ss:$28 sps:$4 sm:$0xff]   ;;  %v1966_v27 = vld [vmem:[#allocation7 + $0x270] ss:$28 sps:$4 sm:$0xff]  }
  0x5e   :  { %268 = vmatpush1.bf16.msra.mxu1 %v1912_v14  ;;  %v1955_v63 = vld [vmem:[#allocation7 + $0x1cc] ss:$28 sps:$4 sm:$0xff]   ;;  %v1964_v25 = vld [vmem:[#allocation7 + $0x78] ss:$28 sps:$4 sm:$0xff]   ;;  %vm1570_vm2 = vcmask 125952  }
  0x5f   :  { %269 = vmatprep.subr.bf16.mxu1 %v1913_v15  ;;  %v167_v3 = vld [vmem:[%s2313_s4] sm:$0x3]  ;;  %v1965_v26 = vld [vmem:[#allocation7 + $0x7c] ss:$28 sps:$4 sm:$0xff]   ;;  %v1967_v28 = vld [vmem:[#allocation7 + $0x274] ss:$28 sps:$4 sm:$0xff]  }
  0x60   :  { %1728 = vmatpush3.bf16.msra.mxu0 %v1936_v30  ;;  %v172_v5 = vrot.slane %v167_v3, %v171_v2  ;;  %v176_v6 = vrot.slane %v167_v3, %v175_v4  ;;  %v1968_v29 = vld [vmem:[#allocation7 + $0xb0] ss:$28 sps:$4 sm:$0xff]   ;;  %v2006_v3 = vld [vmem:[#allocation7 + $0x2e8] ss:$28 sps:$4 sm:$0xff]  }
  0x61   :  { %1729 = vmatprep.subr.bf16.mxu0 %v1938_v31  ;;  %v1969_v30 = vld [vmem:[#allocation7 + $0xb4] ss:$28 sps:$4 sm:$0xff]   ;;  %v1970_v31 = vld [vmem:[#allocation7 + $0x2a8] ss:$28 sps:$4 sm:$0xff]  }
  0x62   :  { %270 = vmatpush1.bf16.msra.mxu1 %v1915_v16  ;;  %v1956_v16 = vld [vmem:[#allocation7 + $0x8] ss:$28 sps:$4 sm:$0xff]   ;;  %v2003_v0 = vld [vmem:[#allocation7 + $0x2b4] ss:$28 sps:$4 sm:$0xff]  }
  0x63   :  { %271 = vmatprep.subr.bf16.mxu1 %v1916_v17  ;;  %v1957_v17 = vld [vmem:[#allocation7 + $0xc] ss:$28 sps:$4 sm:$0xff]   ;;  %v2005_v2 = vld [vmem:[#allocation7 + $0xf4] ss:$28 sps:$4 sm:$0xff]  }
  0x64   :  { %1730 = vmatpush3.bf16.msra.mxu0 %v1940_v32  ;;  %v1971_v32 = vld [vmem:[#allocation7 + $0x2ac] ss:$28 sps:$4 sm:$0xff]  }
  0x65   :  { %1731 = vmatprep.subr.bf16.mxu0 %v1942_v33  ;;  %v1972_v33 = vld [vmem:[#allocation7 + $0xe8] ss:$28 sps:$4 sm:$0xff]   ;;  %v2004_v1 = vld [vmem:[#allocation7 + $0xf0] ss:$28 sps:$4 sm:$0xff]  }
  0x66   :  { %272 = vmatpush1.bf16.msra.mxu1 %v1918_v18  ;;  %v2007_v4 = vld [vmem:[#allocation7 + $0x2ec] ss:$28 sps:$4 sm:$0xff]  }
  0x67   :  { %273 = vmatprep.subr.bf16.mxu1 %v1919_v19  ;;  %v1958_v19 = vld [vmem:[#allocation7 + $0x200] ss:$28 sps:$4 sm:$0xff]  }
  0x68   :  { %1732 = vmatpush3.bf16.msra.mxu0 %v1944_v34  ;;  %v1973_v34 = vld [vmem:[#allocation7 + $0xec] ss:$28 sps:$4 sm:$0xff]  }
  0x69   :  { %1733 = vmatprep.subr.bf16.mxu0 %v1946_v54  ;;  %v1993_v54 = vld [vmem:[#allocation7 + $0x4c] ss:$28 sps:$4 sm:$0xff]  }
  0x6a   :  { %274 = vmatpush1.bf16.msra.mxu1 %v1921_v20  ;;  %v1959_v20 = vld [vmem:[#allocation7 + $0x204] ss:$28 sps:$4 sm:$0xff]  }
  0x6b   :  { %1743 = vmatprep.subr.bf16.mxu1 %v1923_v23  ;;  %v1962_v23 = vld [vmem:[#allocation7 + $0x238] ss:$28 sps:$4 sm:$0xff]  }
  0x6c   :  { %1734 = vmatpush3.bf16.msra.mxu0 %v1948_v56  ;;  %v1995_v56 = vld [vmem:[#allocation7 + $0x244] ss:$28 sps:$4 sm:$0xff]  }
  0x6d   :  { %1735 = vmatprep.subr.bf16.mxu0 %v1950_v58  ;;  %v1997_v58 = vld [vmem:[#allocation7 + $0x84] ss:$28 sps:$4 sm:$0xff]  }
  0x70   :  { %1736 = vmatpush3.bf16.msra.mxu0 %v1952_v60  ;;  %v1999_v60 = vld [vmem:[#allocation7 + $0x27c] ss:$28 sps:$4 sm:$0xff]  }
  0x71   :  { %1765 = vmatprep.subr.bf16.mxu0 %v1954_v62  ;;  %v2001_v62 = vld [vmem:[#allocation7 + $0xbc] ss:$28 sps:$4 sm:$0xff]  }
 0x126   :  { %v143_v36 = vpop.f32.mrb[0].mxu0 }
 0x127   :  { %v144_v37 = vadd.f32 %v1579_v35, %v143_v36  ;;  %v1881_v38 = vpop.f32.mrb[1].mxu0  ;;  %v1974_v35 = vld [vmem:[#allocation7 + $0x2e0] ss:$28 sps:$4 sm:$0xff]  }
 0x128   :  { %v146_v39 = vpop.f32.mrb[2].mxu0  ;;  %v1975_v36 = vld [vmem:[#allocation7 + $0x2e4] ss:$28 sps:$4 sm:$0xff]  }
 0x129   :  { %v149_v40 = vmax.f32 %v144_v37, 0.0  ;;  %v1882_v41 = vpop.f32.mrb[3].mxu0  ;;  %v1976_v37 = vld [vmem:[#allocation7 + $0x120] ss:$28 sps:$4 sm:$0xff]   ;;  %v1978_v39 = vld [vmem:[#allocation7 + $0x318] ss:$28 sps:$4 sm:$0xff]  }
 0x12a   :  { %v1977_v38 = vld [vmem:[#allocation7 + $0x124] ss:$28 sps:$4 sm:$0xff]   ;;  %v1980_v41 = vld [vmem:[#allocation7 + $0x158] ss:$28 sps:$4 sm:$0xff]  }
 0x12b   :  { %v150_v43 = vpack.c.bf16 %v149_v40, %v149_v40  ;;  %v1979_v40 = vld [vmem:[#allocation7 + $0x31c] ss:$28 sps:$4 sm:$0xff]  }
 0x12d   :  { %292 = vmatmul.mubr.bf16.vlgmr.msra.gmra.mrb[0].mxu1 %v150_v43  ;;  %v1982_v43 = vld [vmem:[#allocation7 + $0x350] ss:$28 sps:$4 sm:$0xff]  }
 0x12e   :  { %1744 = vmatpush3.bf16.msra.mxu1 %v1925_v42  ;;  %v1981_v42 = vld [vmem:[#allocation7 + $0x15c] ss:$28 sps:$4 sm:$0xff]  }
 0x12f   :  { %1745 = vmatprep.subr.bf16.mxu1 %v1927_v44  ;;  %v1983_v44 = vld [vmem:[#allocation7 + $0x354] ss:$28 sps:$4 sm:$0xff]  }
 0x132   :  { %1746 = vmatpush3.bf16.msra.mxu1 %v1929_v45  ;;  %v1984_v45 = vld [vmem:[#allocation7 + $0x190] ss:$28 sps:$4 sm:$0xff]  }
 0x133   :  { %1747 = vmatprep.subr.bf16.mxu1 %v1931_v46  ;;  %v1985_v46 = vld [vmem:[#allocation7 + $0x194] ss:$28 sps:$4 sm:$0xff]  }
 0x136   :  { %1748 = vmatpush3.bf16.msra.mxu1 %v1933_v47  ;;  %v1986_v47 = vld [vmem:[#allocation7 + $0x1d0] ss:$28 sps:$4 sm:$0xff]  }
 0x137   :  { %1749 = vmatprep.subr.bf16.mxu1 %v1935_v48  ;;  %v1987_v48 = vld [vmem:[#allocation7 + $0x1d4] ss:$28 sps:$4 sm:$0xff]  }
 0x13a   :  { %1750 = vmatpush3.bf16.msra.mxu1 %v1937_v49  ;;  %v1988_v49 = vld [vmem:[#allocation7 + $0x10] ss:$28 sps:$4 sm:$0xff]  }
 0x13b   :  { %1751 = vmatprep.subr.bf16.mxu1 %v1939_v50  ;;  %v1989_v50 = vld [vmem:[#allocation7 + $0x14] ss:$28 sps:$4 sm:$0xff]  }
 0x13e   :  { %1752 = vmatpush3.bf16.msra.mxu1 %v1941_v51  ;;  %v1990_v51 = vld [vmem:[#allocation7 + $0x208] ss:$28 sps:$4 sm:$0xff]  }
 0x13f   :  { %1753 = vmatprep.subr.bf16.mxu1 %v1943_v52  ;;  %v1991_v52 = vld [vmem:[#allocation7 + $0x20c] ss:$28 sps:$4 sm:$0xff]  }
 0x142   :  { %1754 = vmatpush3.bf16.msra.mxu1 %v1945_v53  ;;  %v1992_v53 = vld [vmem:[#allocation7 + $0x48] ss:$28 sps:$4 sm:$0xff]  }
 0x143   :  { %1755 = vmatprep.subr.bf16.mxu1 %v1947_v55  ;;  %v1994_v55 = vld [vmem:[#allocation7 + $0x240] ss:$28 sps:$4 sm:$0xff]  }
 0x146   :  { %1756 = vmatpush3.bf16.msra.mxu1 %v1949_v57  ;;  %v1996_v57 = vld [vmem:[#allocation7 + $0x80] ss:$28 sps:$4 sm:$0xff]  }
 0x147   :  { %1757 = vmatprep.subr.bf16.mxu1 %v1951_v59  ;;  %v1998_v59 = vld [vmem:[#allocation7 + $0x278] ss:$28 sps:$4 sm:$0xff]  }
 0x14a   :  { %1758 = vmatpush3.bf16.msra.mxu1 %v1953_v61  ;;  %v2000_v61 = vld [vmem:[#allocation7 + $0xb8] ss:$28 sps:$4 sm:$0xff]  }
 0x14b   :  { %1787 = vmatprep.subr.bf16.mxu1 %v1955_v63  ;;  %v2002_v63 = vld [vmem:[#allocation7 + $0x2b0] ss:$28 sps:$4 sm:$0xff]  }
 0x200   :  { %v293_v7 = vpop.f32.mrb[0].mxu1 }
 0x201   :  { %v294_v8 = vadd.f32 %v293_v7, %v172_v5  ;;  %v295_v9 = vpop.f32.mrb[1].mxu1  ;;  %v2008_v5 = vld [vmem:[#allocation7 + $0x128] ss:$28 sps:$4 sm:$0xff]   ;;  %v2010_v7 = vld [vmem:[#allocation7 + $0x320] ss:$28 sps:$4 sm:$0xff]  }
 0x202   :  { %v296_v10 = vadd.f32 %v295_v9, %v176_v6  ;;  %v297_v11 = vpop.f32.mrb[2].mxu1  ;;  %v2009_v6 = vld [vmem:[#allocation7 + $0x12c] ss:$28 sps:$4 sm:$0xff]   ;;  %v2012_v9 = vld [vmem:[#allocation7 + $0x160] ss:$28 sps:$4 sm:$0xff]  }
 0x203   :  { %v300_v12 = vmax.f32 %v294_v8, 0.0  ;;  %v298_v13 = vpop.f32.mrb[3].mxu1  ;;  %v2011_v8 = vld [vmem:[#allocation7 + $0x324] ss:$28 sps:$4 sm:$0xff]   ;;  %v2014_v11 = vld [vmem:[#allocation7 + $0x358] ss:$28 sps:$4 sm:$0xff]  }
 0x204   :  { %v301_v14 = vmax.f32 %v296_v10, 0.0  ;;  %v2013_v10 = vld [vmem:[#allocation7 + $0x164] ss:$28 sps:$4 sm:$0xff]   ;;  %v2016_v13 = vld [vmem:[#allocation7 + $0x198] ss:$28 sps:$4 sm:$0xff]  }
 0x205   :  { %v2251_v18 = vpack.c.bf16 %v300_v12, %v300_v12  ;;  %v2015_v12 = vld [vmem:[#allocation7 + $0x35c] ss:$28 sps:$4 sm:$0xff]  }
 0x206   :  { %v2249_v15 = vpack.c.bf16 %v301_v14, %v301_v14  ;;  %v2017_v14 = vld [vmem:[#allocation7 + $0x19c] ss:$28 sps:$4 sm:$0xff]  }
 0x208   :  { %471 = vmatprep.mubr.bf16.mxu0 %v2249_v15  ;;  %652 = vmatprep.mubr.bf16.mxu1 %v2249_v15 }
 0x209   :  { %472 = vmatmul.mubr.bf16.vlgmr.msra.gmra.mrb[4].mxu0 %v2251_v18  ;;  %653 = vmatmul.mubr.bf16.vlgmr.msra.gmra.mrb[4].mxu1 %v2251_v18 }
 0x20a   :  { %1766 = vmatpush3.bf16.msra.mxu0 %v1956_v16  ;;  %1788 = vmatpush3.bf16.msra.mxu1 %v1957_v17  ;;  %v2018_v16 = vld [vmem:[#allocation7 + $0x1d8] ss:$28 sps:$4 sm:$0xff]  }
 0x20b   :  { %833 = vmatprep.mubr.bf16.mxu0 %v2249_v15  ;;  %1014 = vmatprep.mubr.bf16.mxu1 %v2249_v15  ;;  %v2019_v17 = vld [vmem:[#allocation7 + $0x18] ss:$28 sps:$4 sm:$0xff]  }
 0x20c   :  { %1767 = vmatprep.subr.bf16.mxu0 %v1958_v19  ;;  %1789 = vmatprep.subr.bf16.mxu1 %v1959_v20  ;;  %v2020_v19 = vld [vmem:[#allocation7 + $0x210] ss:$28 sps:$4 sm:$0xff]  }
 0x20d   :  { %v2021_v20 = vld [vmem:[#allocation7 + $0x50] ss:$28 sps:$4 sm:$0xff]  }
 0x20e   :  { %1768 = vmatpush3.bf16.msra.mxu0 %v1960_v21  ;;  %1790 = vmatpush3.bf16.msra.mxu1 %v1961_v22  ;;  %v2022_v21 = vld [vmem:[#allocation7 + $0x248] ss:$28 sps:$4 sm:$0xff]  }
 0x20f   :  { %1769 = vmatprep.subr.bf16.mxu0 %v1962_v23  ;;  %1791 = vmatprep.subr.bf16.mxu1 %v1963_v24  ;;  %v2023_v22 = vld [vmem:[#allocation7 + $0x88] ss:$28 sps:$4 sm:$0xff]   ;;  %v2024_v23 = vld [vmem:[#allocation7 + $0x280] ss:$28 sps:$4 sm:$0xff]  }
 0x210   :  { %v2025_v24 = vld [vmem:[#allocation7 + $0xc0] ss:$28 sps:$4 sm:$0xff]  }
 0x212   :  { %1770 = vmatpush3.bf16.msra.mxu0 %v1964_v25  ;;  %1792 = vmatpush3.bf16.msra.mxu1 %v1965_v26  ;;  %v2026_v25 = vld [vmem:[#allocation7 + $0x2b8] ss:$28 sps:$4 sm:$0xff]  }
 0x213   :  { %1771 = vmatprep.subr.bf16.mxu0 %v1966_v27  ;;  %1793 = vmatprep.subr.bf16.mxu1 %v1967_v28  ;;  %v2027_v26 = vld [vmem:[#allocation7 + $0xf8] ss:$28 sps:$4 sm:$0xff]   ;;  %v2028_v27 = vld [vmem:[#allocation7 + $0x2f0] ss:$28 sps:$4 sm:$0xff]  }
 0x214   :  { %v2029_v28 = vld [vmem:[#allocation7 + $0x130] ss:$28 sps:$4 sm:$0xff]  }
 0x216   :  { %1772 = vmatpush3.bf16.msra.mxu0 %v1968_v29  ;;  %1794 = vmatpush3.bf16.msra.mxu1 %v1969_v30  ;;  %v2030_v29 = vld [vmem:[#allocation7 + $0x328] ss:$28 sps:$4 sm:$0xff]   ;;  %v2032_v30 = vld [vmem:[#allocation7 + $0x360] ss:$28 sps:$4 sm:$0xff]  }
 0x217   :  { %1773 = vmatprep.subr.bf16.mxu0 %v1970_v31  ;;  %1795 = vmatprep.subr.bf16.mxu1 %v1971_v32  ;;  %v2033_v31 = vld [vmem:[#allocation7 + $0x1a0] ss:$28 sps:$4 sm:$0xff]  }
 0x21a   :  { %1774 = vmatpush3.bf16.msra.mxu0 %v1972_v33  ;;  %1796 = vmatpush3.bf16.msra.mxu1 %v1973_v34  ;;  %v1599_v34 = vld [vmem:[%s2315_s6] ss:$0 sm:$0xff] }
 0x21b   :  { %1775 = vmatprep.subr.bf16.mxu0 %v1974_v35  ;;  %1797 = vmatprep.subr.bf16.mxu1 %v1975_v36  ;;  %v1616_v36 = vld [vmem:[%s2315_s6 + $0x1] ss:$0 sm:$0xff] }
 0x21e   :  { %1776 = vmatpush3.bf16.msra.mxu0 %v1976_v37  ;;  %1798 = vmatpush3.bf16.msra.mxu1 %v1977_v38 }
 0x21f   :  { %1777 = vmatprep.subr.bf16.mxu0 %v1978_v39  ;;  %1799 = vmatprep.subr.bf16.mxu1 %v1979_v40 }
 0x222   :  { %1778 = vmatpush3.bf16.msra.mxu0 %v1980_v41  ;;  %1800 = vmatpush3.bf16.msra.mxu1 %v1981_v42 }
 0x223   :  { %1779 = vmatprep.subr.bf16.mxu0 %v1982_v43  ;;  %1801 = vmatprep.subr.bf16.mxu1 %v1983_v44 }
 0x226   :  { %1780 = vmatpush3.bf16.msra.mxu0 %v1984_v45  ;;  %1802 = vmatpush3.bf16.msra.mxu1 %v1985_v46 }
 0x227   :  { %1809 = vmatprep.subr.bf16.mxu0 %v1986_v47  ;;  %1831 = vmatprep.subr.bf16.mxu1 %v1987_v48 }
 0x229   :  { %834 = vmatmul.mubr.bf16.vlgmr.msra.gmra.mrb[8].mxu0 %v2251_v18  ;;  %1015 = vmatmul.mubr.bf16.vlgmr.msra.gmra.mrb[8].mxu1 %v2251_v18 }
 0x22a   :  { %1810 = vmatpush3.bf16.msra.mxu0 %v1988_v49  ;;  %1195 = vmatprep.mubr.bf16.mxu0 %v2249_v15 }
 0x22b   :  { %1832 = vmatpush3.bf16.msra.mxu1 %v1989_v50  ;;  %1376 = vmatprep.mubr.bf16.mxu1 %v2249_v15 }
 0x22c   :  { %1811 = vmatprep.subr.bf16.mxu0 %v1990_v51  ;;  %1833 = vmatprep.subr.bf16.mxu1 %v1991_v52 }
 0x22e   :  { %1812 = vmatpush3.bf16.msra.mxu0 %v1992_v53 }
 0x22f   :  { %1834 = vmatpush3.bf16.msra.mxu1 %v1993_v54  ;;  %1813 = vmatprep.subr.bf16.mxu0 %v1994_v55 }
 0x230   :  { %1835 = vmatprep.subr.bf16.mxu1 %v1995_v56 }
 0x232   :  { %1814 = vmatpush3.bf16.msra.mxu0 %v1996_v57  ;;  %v1633_v57 = vld [vmem:[%s2315_s6 + $0x2] ss:$0 sm:$0xff] }
 0x233   :  { %1836 = vmatpush3.bf16.msra.mxu1 %v1997_v58  ;;  %1815 = vmatprep.subr.bf16.mxu0 %v1998_v59  ;;  %v1650_v59 = vld [vmem:[%s2315_s6 + $0x3] ss:$0 sm:$0xff] }
 0x234   :  { %1837 = vmatprep.subr.bf16.mxu1 %v1999_v60 }
 0x236   :  { %1816 = vmatpush3.bf16.msra.mxu0 %v2000_v61 }
 0x237   :  { %1838 = vmatpush3.bf16.msra.mxu1 %v2001_v62  ;;  %1817 = vmatprep.subr.bf16.mxu0 %v2002_v63 }
 0x238   :  { %1839 = vmatprep.subr.bf16.mxu1 %v2003_v0 }
 0x23a   :  { %1818 = vmatpush3.bf16.msra.mxu0 %v2004_v1 }
 0x23b   :  { %1840 = vmatpush3.bf16.msra.mxu1 %v2005_v2  ;;  %1819 = vmatprep.subr.bf16.mxu0 %v2006_v3 }
 0x23c   :  { %1841 = vmatprep.subr.bf16.mxu1 %v2007_v4 }
 0x23e   :  { %1820 = vmatpush3.bf16.msra.mxu0 %v2008_v5 }
 0x23f   :  { %1842 = vmatpush3.bf16.msra.mxu1 %v2009_v6  ;;  %1821 = vmatprep.subr.bf16.mxu0 %v2010_v7 }
 0x240   :  { %1843 = vmatprep.subr.bf16.mxu1 %v2011_v8 }
 0x242   :  { %1822 = vmatpush3.bf16.msra.mxu0 %v2012_v9 }
 0x243   :  { %1844 = vmatpush3.bf16.msra.mxu1 %v2013_v10  ;;  %1823 = vmatprep.subr.bf16.mxu0 %v2014_v11 }
 0x244   :  { %1845 = vmatprep.subr.bf16.mxu1 %v2015_v12 }
 0x246   :  { %1824 = vmatpush3.bf16.msra.mxu0 %v2016_v13 }
 0x247   :  { %1846 = vmatpush3.bf16.msra.mxu1 %v2017_v14  ;;  %1853 = vmatprep.subr.bf16.mxu0 %v2018_v16 }
 0x249   :  { %1196 = vmatmul.mubr.bf16.vlgmr.msra.gmra.mrb[12].mxu0 %v2251_v18 }
 0x24a   :  { %1377 = vmatmul.mubr.bf16.vlgmr.msra.gmra.mrb[12].mxu1 %v2251_v18  ;;  %1854 = vmatpush3.bf16.msra.mxu0 %v2019_v17 }
 0x24b   :  { %1557 = vmatprep.mubr.bf16.mxu0 %v2249_v15  ;;  %1855 = vmatprep.subr.bf16.mxu0 %v2020_v19  ;;  %v2031_v15 = vld [vmem:[#allocation7 + $0x168] ss:$28 sps:$4 sm:$0xff]   ;;  %v1667_v19 = vld [vmem:[%s2315_s6 + $0x4] ss:$0 sm:$0xff] }
 0x24e   :  { %1856 = vmatpush3.bf16.msra.mxu0 %v2021_v20 }
 0x24f   :  { %1857 = vmatprep.subr.bf16.mxu0 %v2022_v21 }
 0x252   :  { %1858 = vmatpush3.bf16.msra.mxu0 %v2023_v22  ;;  %v1684_v22 = vld [vmem:[%s2315_s6 + $0x5] ss:$0 sm:$0xff] }
 0x253   :  { %1859 = vmatprep.subr.bf16.mxu0 %v2024_v23 }
 0x256   :  { %1860 = vmatpush3.bf16.msra.mxu0 %v2025_v24 }
 0x257   :  { %1861 = vmatprep.subr.bf16.mxu0 %v2026_v25 }
 0x25a   :  { %1862 = vmatpush3.bf16.msra.mxu0 %v2027_v26 }
 0x25b   :  { %1863 = vmatprep.subr.bf16.mxu0 %v2028_v27 }
 0x25e   :  { %1864 = vmatpush3.bf16.msra.mxu0 %v2029_v28 }
 0x25f   :  { %1865 = vmatprep.subr.bf16.mxu0 %v2030_v29 }
 0x262   :  { %1866 = vmatpush3.bf16.msra.mxu0 %v2031_v15 }
 0x263   :  { %1867 = vmatprep.subr.bf16.mxu0 %v2032_v30 }
 0x266   :  { %1868 = vmatpush3.bf16.msra.mxu0 %v2033_v31 }
 0x269   :  { %1558 = vmatmul.mubr.bf16.vlgmr.msra.gmra.mrb[16].mxu0 %v2251_v18 }
 0x2dc   :  { %v1737_v32 = vpop.f32.mrb[4].mxu0  ;;  %v1759_v33 = vpop.f32.mrb[4].mxu1 }
 0x2dd   :  { %v1738_v35 = vpop.f32.mrb[5].mxu0  ;;  %v1760_v37 = vpop.f32.mrb[5].mxu1 }
 0x2de   :  { %v1739_v38 = vadd.f32 %v1738_v35, %v1737_v32  ;;  %v1761_v39 = vadd.f32 %v1760_v37, %v1759_v33  ;;  %v1740_v40 = vpop.f32.mrb[6].mxu0  ;;  %v1762_v41 = vpop.f32.mrb[6].mxu1 }
 0x2df   :  { %v1741_v42 = vpop.f32.mrb[7].mxu0  ;;  %v1763_v43 = vpop.f32.mrb[7].mxu1  ;;  %v1701_v41 = vld [vmem:[%s2315_s6 + $0x6] ss:$0 sm:$0xff] }
 0x2e0   :  { %v474_v44 = vadd.f32 %v1739_v38, %v1599_v34  ;;  %v655_v18 = vadd.f32 %v1761_v39, %v1616_v36 }
 0x2e2   :  { %v479_v45 = vmul.f32 0.5, %v474_v44  ;;  %v660_v46 = vmul.f32 0.5, %v655_v18 }
 0x2e4   :  { %2034 = vtanh.f32 %v479_v45 }
 0x2e5   :  { %2036 = vtanh.f32 %v660_v46 }
 0x2ee   :  { %v2035_v47 = vpop.eup %2034 }
 0x2ef   :  { %v2037_v48 = vpop.eup %2036  ;;  %v481_v49 = vadd.f32 1.0, %v2035_v47 }
 0x2f0   :  { %v662_v50 = vadd.f32 1.0, %v2037_v48 }
 0x2f1   :  { %v482_v51 = vmul.f32 0.5, %v481_v49 }
 0x2f2   :  { %v663_v52 = vmul.f32 0.5, %v662_v50 }
 0x2f3   :  { %v483_v53 = vpack.c.bf16 %v482_v51, %v482_v51 }
 0x2f4   :  { %v664_v54 = vpack.c.bf16 %v663_v52, %v663_v52 }
 0x2f5   :  { %484 = vst [vmem:[%s2316_s7] sm:$0xf] %v483_v53 }
 0x2f6   :  { %665 = vst [vmem:[%s2316_s7 + $0x4] sm:$0xf] %v664_v54 }
 0x2fc   :  { %v1781_v55 = vpop.f32.mrb[8].mxu0  ;;  %v1803_v56 = vpop.f32.mrb[8].mxu1 }
 0x2fd   :  { %v1782_v58 = vpop.f32.mrb[9].mxu0  ;;  %v1804_v60 = vpop.f32.mrb[9].mxu1 }
 0x2fe   :  { %v1783_v61 = vadd.f32 %v1782_v58, %v1781_v55  ;;  %v1805_v62 = vadd.f32 %v1804_v60, %v1803_v56  ;;  %v1784_v63 = vpop.f32.mrb[10].mxu0  ;;  %v1806_v0 = vpop.f32.mrb[10].mxu1 }
 0x2ff   :  { %v1785_v1 = vpop.f32.mrb[11].mxu0  ;;  %v1807_v2 = vpop.f32.mrb[11].mxu1 }
 0x300   :  { %v836_v3 = vadd.f32 %v1783_v61, %v1633_v57  ;;  %v1017_v4 = vadd.f32 %v1805_v62, %v1650_v59 }
 0x302   :  { %v841_v5 = vmul.f32 0.5, %v836_v3  ;;  %v1022_v6 = vmul.f32 0.5, %v1017_v4 }
 0x304   :  { %2038 = vtanh.f32 %v841_v5 }
 0x305   :  { %2040 = vtanh.f32 %v1022_v6 }
 0x30e   :  { %v2039_v7 = vpop.eup %2038 }
 0x30f   :  { %v2041_v8 = vpop.eup %2040  ;;  %v843_v9 = vadd.f32 1.0, %v2039_v7 }
 0x310   :  { %v1024_v10 = vadd.f32 1.0, %v2041_v8 }
 0x311   :  { %v844_v11 = vmul.f32 0.5, %v843_v9 }
 0x312   :  { %v1025_v12 = vmul.f32 0.5, %v1024_v10 }
 0x313   :  { %v845_v13 = vpack.c.bf16 %v844_v11, %v844_v11 }
 0x314   :  { %v1026_v14 = vpack.c.bf16 %v1025_v12, %v1025_v12 }
 0x315   :  { %846 = vst [vmem:[%s2316_s7 + $0x8] sm:$0xf] %v845_v13 }
 0x316   :  { %1027 = vst [vmem:[%s2316_s7 + $0xc] sm:$0xf] %v1026_v14 }
 0x31c   :  { %v1825_v16 = vpop.f32.mrb[12].mxu0 }
 0x31d   :  { %v1847_v17 = vpop.f32.mrb[12].mxu1  ;;  %v1826_v20 = vpop.f32.mrb[13].mxu0 }
 0x31e   :  { %v1827_v21 = vadd.f32 %v1826_v20, %v1825_v16  ;;  %v1848_v23 = vpop.f32.mrb[13].mxu1  ;;  %v1828_v24 = vpop.f32.mrb[14].mxu0 }
 0x31f   :  { %v1849_v25 = vadd.f32 %v1848_v23, %v1847_v17  ;;  %v1850_v26 = vpop.f32.mrb[14].mxu1  ;;  %v1829_v27 = vpop.f32.mrb[15].mxu0 }
 0x320   :  { %v1198_v28 = vadd.f32 %v1827_v21, %v1667_v19  ;;  %v1851_v29 = vpop.f32.mrb[15].mxu1 }
 0x321   :  { %v1379_v15 = vadd.f32 %v1849_v25, %v1684_v22 }
 0x322   :  { %v1203_v30 = vmul.f32 0.5, %v1198_v28 }
 0x323   :  { %v1384_v31 = vmul.f32 0.5, %v1379_v15 }
 0x324   :  { %2042 = vtanh.f32 %v1203_v30 }
 0x325   :  { %2044 = vtanh.f32 %v1384_v31 }
 0x32e   :  { %v2043_v32 = vpop.eup %2042 }
 0x32f   :  { %v2045_v33 = vpop.eup %2044  ;;  %v1205_v34 = vadd.f32 1.0, %v2043_v32 }
 0x330   :  { %v1386_v35 = vadd.f32 1.0, %v2045_v33 }
 0x331   :  { %v1206_v36 = vmul.f32 0.5, %v1205_v34 }
 0x332   :  { %v1387_v37 = vmul.f32 0.5, %v1386_v35 }
 0x333   :  { %v1207_v38 = vpack.c.bf16 %v1206_v36, %v1206_v36 }
 0x334   :  { %v1388_v39 = vpack.c.bf16 %v1387_v37, %v1387_v37 }
 0x335   :  { %1208 = vst [vmem:[%s2316_s7 + $0x10] sm:$0xf] %v1207_v38 }
 0x336   :  { %1389 = vst [vmem:[%s2316_s7 + $0x14] sm:$0xf] %v1388_v39 }
 0x33c   :  { %v1869_v40 = vpop.f32.mrb[16].mxu0 }
 0x33d   :  { %v1870_v42 = vpop.f32.mrb[17].mxu0 }
 0x33e   :  { %v1871_v43 = vadd.f32 %v1870_v42, %v1869_v40  ;;  %v1872_v44 = vpop.f32.mrb[18].mxu0 }
 0x33f   :  { %v1873_v18 = vpop.f32.mrb[19].mxu0 }
 0x340   :  { %v1560_v45 = vadd.f32 %v1871_v43, %v1701_v41 }
 0x342   :  { %v1565_v46 = vmul.f32 0.5, %v1560_v45 }
 0x344   :  { %2046 = vtanh.f32 %v1565_v46 }
 0x34e   :  { %v2047_v47 = vpop.eup %2046 }
 0x34f   :  { %v1567_v48 = vadd.f32 1.0, %v2047_v47 }
 0x351   :  { %v1568_v49 = vmul.f32 0.5, %v1567_v48 }
 0x353   :  { %v1569_v50 = vpack.c.bf16 %v1568_v49, %v1568_v49 }
 0x355   :  { %1571 = vst.msk [vmem:[%s2316_s7 + $0x18] sm:$0xf] %vm1570_vm2, %v1569_v50 }
 0x356   :  { %1576 = vsyncpa [#allocation3], 1 }
 0x357   :  { %1577 = vsyncpa [#allocation5], 1 }
 0x358   :  { %1578 = vsyncpa [#allocation8], 1 }

</bundles_post_ra>
